<compile_context>
chip_gen: v5e
topology: v5e:2x2
jax: 0.10.0
libtpu: 0.0.40
codegen_flags: <defaults>
</compile_context>

<pallas_src>
import math
import numpy as np
import jax
import jax.numpy as jnp
from jax.experimental import pallas as pl
from jax.experimental.pallas import tpu as pltpu

# ---- small config consistent with the module ----
B = 2                  # batch
D_NODES = 16           # number of KG nodes == number of tabular features (10 num + 6 cat)
FV = 8                 # V (KG node feature) dim
EMBED = 32             # input_embed_dim
HID = 32               # conv_hidden_dim
NUM_LAYERS = 2         # conv_num_layers (GCNConv)
EDGE_ACTIVE_RATIO = 0.5
POOL = "max"           # conv_pool_method
N = B * D_NODES

# ---- packed constant-slab layout (all row offsets are multiples of 8) ----
SLAB_COLS = 32                      # = max(EMBED, HID, D_NODES)
ROW_V = 0                           # V      : rows  0..15, cols 0..FV-1
ROW_WE = ROW_V + D_NODES            # We     : rows 16..47, rows >= FV are zero (padded contraction)
ROW_BIAS = ROW_WE + SLAB_COLS       # biases : row 48 = be, 49 = b1, 50 = b2 (rest zero)
ROW_A = ROW_BIAS + 8                # A_small: rows 56..71, cols >= D are zero
ROW_W1 = ROW_A + D_NODES            # W1     : rows 72..103
ROW_W2 = ROW_W1 + EMBED             # W2     : rows 104..135
SLAB_ROWS = ROW_W2 + HID            # 136


# -------------------- Pallas kernel (single invocation, whole batch) --------------------
def gnn_kernel(scale_ref, p_ref, out_ref, h_ref):
    # Static, sublane-aligned views into the packed constant slab.
    V_blk = p_ref[ROW_V:ROW_V + D_NODES, :]            # [D, 32]  (cols >= FV are zero)
    We_blk = p_ref[ROW_WE:ROW_WE + SLAB_COLS, :]        # [32, E]  (rows >= FV are zero)
    be = p_ref[ROW_BIAS + 0:ROW_BIAS + 1, :]            # [1, E]
    b1 = p_ref[ROW_BIAS + 1:ROW_BIAS + 2, :]            # [1, H]
    b2 = p_ref[ROW_BIAS + 2:ROW_BIAS + 3, :]            # [1, H]
    A_blk = p_ref[ROW_A:ROW_A + D_NODES, :]             # [D, 32]  (cols >= D are zero)
    W1 = p_ref[ROW_W1:ROW_W1 + EMBED, :]                # [E, H]
    W2 = p_ref[ROW_W2:ROW_W2 + HID, :]                  # [H, H]

    # Batch-invariant GEMMs, computed exactly once for the whole batch.
    # embed_fc(V): zero-padded contraction (cols>=FV of V_blk / rows>=FV of We_blk are 0).
    embed = jnp.dot(V_blk, We_blk, preferred_element_type=jnp.float32) + be   # [D, E]
    m1 = jnp.dot(embed, W1, preferred_element_type=jnp.float32)               # [D, H]

    # Per-node scalar multiplier, hoisted through the layer-1 GEMM:
    #   (scale * embed) @ W1 == scale * (embed @ W1)
    h_ref[...] = scale_ref[...] * jnp.concatenate([m1] * B, axis=0)           # [N, H]

    # Layer 1: A_hat = blockdiag(A_small, I) -> aggregate only the first D rows.
    # A_blk's zero-padded columns (>= D) make this exactly A_small @ h[:D].
    h_ref[0:D_NODES, :] = jnp.dot(A_blk, h_ref[...], preferred_element_type=jnp.float32)
    h_ref[...] = jnp.maximum(h_ref[...] + b1, 0.0)

    # Layer 2: one [N, H] @ [H, H] MXU call for the whole batch, then the same
    # first-D-rows aggregation.
    h_ref[...] = jnp.dot(h_ref[...], W2, preferred_element_type=jnp.float32)
    h_ref[0:D_NODES, :] = jnp.dot(A_blk, h_ref[...], preferred_element_type=jnp.float32)
    h_ref[...] = jnp.maximum(h_ref[...] + b2, 0.0)

    # Per-batch max-pool over the node axis; single [B, H] store.
    out_ref[...] = jnp.concatenate(
        [jnp.max(h_ref[b * D_NODES:(b + 1) * D_NODES, :], axis=0, keepdims=True)
         for b in range(B)],
        axis=0)


# -------------------- wrapper-side packing + call --------------------
def pack_params(V, We, be, A_small, W1, b1, W2, b2):
    slab = np.zeros((SLAB_ROWS, SLAB_COLS), dtype=np.float32)
    slab[ROW_V:ROW_V + D_NODES, :FV] = np.asarray(V, dtype=np.float32)
    slab[ROW_WE:ROW_WE + FV, :EMBED] = np.asarray(We, dtype=np.float32)
    slab[ROW_BIAS + 0, :EMBED] = np.asarray(be, dtype=np.float32)
    slab[ROW_BIAS + 1, :HID] = np.asarray(b1, dtype=np.float32)
    slab[ROW_BIAS + 2, :HID] = np.asarray(b2, dtype=np.float32)
    slab[ROW_A:ROW_A + D_NODES, :D_NODES] = np.asarray(A_small, dtype=np.float32)
    slab[ROW_W1:ROW_W1 + EMBED, :HID] = np.asarray(W1, dtype=np.float32)
    slab[ROW_W2:ROW_W2 + HID, :HID] = np.asarray(W2, dtype=np.float32)
    return jnp.asarray(slab)


def gnn_forward(X, params_slab):
    # Row b*D + d of the scale column is X[b, d], matching x.view(B*D, -1).
    scale = X.reshape(N, 1).astype(jnp.float32)
    return pl.pallas_call(
        gnn_kernel,
        out_shape=jax.ShapeDtypeStruct((B, HID), jnp.float32),
        grid_spec=pltpu.PrefetchScalarGridSpec(
            num_scalar_prefetch=0,
            grid=(1,),
            in_specs=[
                pl.BlockSpec((N, 1), lambda i: (0, 0)),                 # per-node scale column
                pl.BlockSpec((SLAB_ROWS, SLAB_COLS), lambda i: (0, 0)),  # packed constants
            ],
            out_specs=pl.BlockSpec((B, HID), lambda i: (0, 0)),
            scratch_shapes=[pltpu.VMEM((N, HID), jnp.float32)],
        ),
    )(scale, params_slab)


# -------------------- graph construction (init-time glue) --------------------
def build_edge_index():
    # synthetic KG ring graph with signed weights, filtered by edge_active_ratio
    rs = np.random.RandomState(0)
    src = np.arange(D_NODES)
    dst = (src + 1) % D_NODES
    ei = np.concatenate([np.stack([src, dst]), np.stack([dst, src])], axis=1)  # [2, 2D]
    w_half = rs.uniform(-1.0, 1.0, size=D_NODES).astype(np.float32)
    ew = np.concatenate([w_half, w_half])
    w_pos = sorted(ew[ew > 0.0].tolist(), reverse=True)
    w_neg = sorted(ew[ew < 0.0].tolist())
    x_pos = w_pos[math.ceil(len(w_pos) * EDGE_ACTIVE_RATIO) - 1]
    x_neg = w_neg[math.ceil(len(w_neg) * EDGE_ACTIVE_RATIO) - 1] if w_neg else -1e8
    mask = (ew >= x_pos) | (ew <= x_neg)
    return ei[:, mask]


def gcn_norm_dense(edge_index, num_nodes):
    # dense D^{-1/2} (A + I) D^{-1/2}, matching pyg GCNConv defaults
    A = np.zeros((num_nodes, num_nodes), dtype=np.float32)
    A[edge_index[1], edge_index[0]] = 1.0          # message src -> dst
    A += np.eye(num_nodes, dtype=np.float32)       # add self loops
    deg = A.sum(axis=1)
    dinv = 1.0 / np.sqrt(np.maximum(deg, 1e-12))
    return (dinv[:, None] * A * dinv[None, :]).astype(np.float32)


# -------------------- pure-JAX reference (unoptimized math, full dense A_hat) --------------------
def reference(X, V, We, be, A_full, W1, b1, W2, b2):
    embed = V @ We + be
    h = (X[:, :, None] * embed[None, :, :]).reshape(N, EMBED)
    h = jnp.maximum(A_full @ (h @ W1) + b1, 0.0)
    h = jnp.maximum(A_full @ (h @ W2) + b2, 0.0)
    return h.reshape(B, D_NODES, HID).max(axis=1)


if __name__ == "__main__":
    key = jax.random.PRNGKey(0)
    ks = jax.random.split(key, 10)

    # inputs (X_num: [B, 10], X_cat: [B, 6]  ->  D = 16 features / KG nodes)
    X_num = jax.random.normal(ks[0], (B, 10), dtype=jnp.float32)
    X_cat = jax.random.normal(ks[1], (B, 6), dtype=jnp.float32)
    X = jnp.concatenate([X_num, X_cat], axis=1)                 # [B, D]

    # KG node features + deterministic parameters
    V = jax.random.normal(ks[2], (D_NODES, FV), dtype=jnp.float32)
    We = jax.random.normal(ks[3], (FV, EMBED), dtype=jnp.float32) * (1.0 / np.sqrt(FV))
    be = jax.random.normal(ks[4], (EMBED,), dtype=jnp.float32) * 0.01
    W1 = jax.random.normal(ks[5], (EMBED, HID), dtype=jnp.float32) * (1.0 / np.sqrt(EMBED))
    b1 = jax.random.normal(ks[6], (HID,), dtype=jnp.float32) * 0.01
    W2 = jax.random.normal(ks[7], (HID, HID), dtype=jnp.float32) * (1.0 / np.sqrt(HID))
    b2 = jax.random.normal(ks[8], (HID,), dtype=jnp.float32) * 0.01

    # graph -> normalized adjacency
    edge_index = build_edge_index()
    # kernel operand: only the [D, D] connected block (all other rows of the
    # full A_hat are identity self-loops and are handled analytically)
    A_small = gcn_norm_dense(edge_index, D_NODES)
    # reference operand: full dense normalized adjacency over the B*D node set
    A_full = jnp.asarray(gcn_norm_dense(edge_index, N))

    params_slab = pack_params(V, We, be, A_small, W1, b1, W2, b2)

    out = gnn_forward(X, params_slab)
    out = jax.block_until_ready(out)

    ref = reference(X, V, We, be, A_full, W1, b1, W2, b2)
    assert out.shape == (B, HID)
    np.testing.assert_allclose(np.asarray(out), np.asarray(ref), rtol=1e-5, atol=1e-5)

    # TODO(synk): the auxiliary loss D(z1, z2) is not part of forward() and is not implemented here.
    print("KERNEL_OK")
</pallas_src>

<mosaic_0001>
module attributes {stable_mosaic.version = 11 : i64} {
  func.func @gnn_kernel(%arg0: i32, %arg1: memref<32x1xf32, #tpu.memory_space<vmem>>, %arg2: memref<136x32xf32, #tpu.memory_space<vmem>>, %arg3: memref<2x32xf32, #tpu.memory_space<vmem>>, %arg4: memref<32x32xf32, #tpu.memory_space<vmem>>) attributes {dimension_semantics = [#tpu.dimension_semantics<arbitrary>], iteration_bounds = array<i64: 1>, scalar_prefetch = 0 : i64, scratch_operands = 1 : i64, tpu.core_type = #tpu.core_type<tc>, window_params = [{pipeline_mode = #tpu.pipeline_mode<synchronous>, transform_indices = @transform_0, window_bounds = array<i64: 32, 1>}, {pipeline_mode = #tpu.pipeline_mode<synchronous>, transform_indices = @transform_1, window_bounds = array<i64: 136, 32>}, {pipeline_mode = #tpu.pipeline_mode<synchronous>, transform_indices = @transform_2, window_bounds = array<i64: 2, 32>}]} {
    %c0 = arith.constant 0 : index
    %c0_0 = arith.constant 0 : index
    %0 = vector.load %arg2[%c0, %c0_0] : memref<136x32xf32, #tpu.memory_space<vmem>>, vector<16x32xf32>
    %c16 = arith.constant 16 : index
    %c0_1 = arith.constant 0 : index
    %1 = vector.load %arg2[%c16, %c0_1] : memref<136x32xf32, #tpu.memory_space<vmem>>, vector<32x32xf32>
    %c48 = arith.constant 48 : index
    %c0_2 = arith.constant 0 : index
    %2 = vector.load %arg2[%c48, %c0_2] : memref<136x32xf32, #tpu.memory_space<vmem>>, vector<1x32xf32>
    %c49 = arith.constant 49 : index
    %c0_3 = arith.constant 0 : index
    %3 = vector.load %arg2[%c49, %c0_3] : memref<136x32xf32, #tpu.memory_space<vmem>>, vector<1x32xf32>
    %c50 = arith.constant 50 : index
    %c0_4 = arith.constant 0 : index
    %4 = vector.load %arg2[%c50, %c0_4] : memref<136x32xf32, #tpu.memory_space<vmem>>, vector<1x32xf32>
    %c56 = arith.constant 56 : index
    %c0_5 = arith.constant 0 : index
    %5 = vector.load %arg2[%c56, %c0_5] : memref<136x32xf32, #tpu.memory_space<vmem>>, vector<16x32xf32>
    %c72 = arith.constant 72 : index
    %c0_6 = arith.constant 0 : index
    %6 = vector.load %arg2[%c72, %c0_6] : memref<136x32xf32, #tpu.memory_space<vmem>>, vector<32x32xf32>
    %c104 = arith.constant 104 : index
    %c0_7 = arith.constant 0 : index
    %7 = vector.load %arg2[%c104, %c0_7] : memref<136x32xf32, #tpu.memory_space<vmem>>, vector<32x32xf32>
    %cst = arith.constant dense<0.000000e+00> : vector<16x32xf32>
    %8 = tpu.matmul %0, %1, %cst {dimension_numbers = #tpu.dot_dimension_numbers<[1], [0], [0], [1], [0, 0, 1, 1], [], []>} : vector<16x32xf32>, vector<32x32xf32>, vector<16x32xf32> -> vector<16x32xf32>
    %9 = vector.broadcast %2 : vector<1x32xf32> to vector<16x32xf32>
    %10 = arith.addf %8, %9 : vector<16x32xf32>
    %cst_8 = arith.constant dense<0.000000e+00> : vector<16x32xf32>
    %11 = tpu.matmul %10, %6, %cst_8 {dimension_numbers = #tpu.dot_dimension_numbers<[1], [0], [0], [1], [0, 0, 1, 1], [], []>} : vector<16x32xf32>, vector<32x32xf32>, vector<16x32xf32> -> vector<16x32xf32>
    %c0_9 = arith.constant 0 : index
    %c0_10 = arith.constant 0 : index
    %12 = vector.load %arg1[%c0_9, %c0_10] : memref<32x1xf32, #tpu.memory_space<vmem>>, vector<32x1xf32>
    %13 = tpu.concatenate %11, %11 in 0 : vector<16x32xf32>, vector<16x32xf32> -> vector<32x32xf32>
    %14 = vector.broadcast %12 : vector<32x1xf32> to vector<32x32xf32>
    %15 = arith.mulf %14, %13 : vector<32x32xf32>
    %c0_11 = arith.constant 0 : index
    %c0_12 = arith.constant 0 : index
    %16 = vector.load %arg4[%c0_11, %c0_12] : memref<32x32xf32, #tpu.memory_space<vmem>>, vector<32x32xf32>
    tpu.vector_store %arg4[%c0_11, %c0_12], %15 {strides = array<i32>} : memref<32x32xf32, #tpu.memory_space<vmem>>, vector<32x32xf32>,
    %c0_13 = arith.constant 0 : index
    %c0_14 = arith.constant 0 : index
    %17 = vector.load %arg4[%c0_13, %c0_14] : memref<32x32xf32, #tpu.memory_space<vmem>>, vector<32x32xf32>
    %cst_15 = arith.constant dense<0.000000e+00> : vector<16x32xf32>
    %18 = tpu.matmul %5, %17, %cst_15 {dimension_numbers = #tpu.dot_dimension_numbers<[1], [0], [0], [1], [0, 0, 1, 1], [], []>} : vector<16x32xf32>, vector<32x32xf32>, vector<16x32xf32> -> vector<16x32xf32>
    %c0_16 = arith.constant 0 : index
    %c0_17 = arith.constant 0 : index
    %19 = vector.load %arg4[%c0_16, %c0_17] : memref<32x32xf32, #tpu.memory_space<vmem>>, vector<16x32xf32>
    tpu.vector_store %arg4[%c0_16, %c0_17], %18 {strides = array<i32>} : memref<32x32xf32, #tpu.memory_space<vmem>>, vector<16x32xf32>,
    %c0_18 = arith.constant 0 : index
    %c0_19 = arith.constant 0 : index
    %20 = vector.load %arg4[%c0_18, %c0_19] : memref<32x32xf32, #tpu.memory_space<vmem>>, vector<32x32xf32>
    %21 = vector.broadcast %3 : vector<1x32xf32> to vector<32x32xf32>
    %22 = arith.addf %20, %21 : vector<32x32xf32>
    %cst_20 = arith.constant 0.000000e+00 : f32
    %23 = vector.broadcast %cst_20 : f32 to vector<32x32xf32>
    %24 = arith.maximumf %22, %23 : vector<32x32xf32>
    %c0_21 = arith.constant 0 : index
    %c0_22 = arith.constant 0 : index
    %25 = vector.load %arg4[%c0_21, %c0_22] : memref<32x32xf32, #tpu.memory_space<vmem>>, vector<32x32xf32>
    tpu.vector_store %arg4[%c0_21, %c0_22], %24 {strides = array<i32>} : memref<32x32xf32, #tpu.memory_space<vmem>>, vector<32x32xf32>,
    %c0_23 = arith.constant 0 : index
    %c0_24 = arith.constant 0 : index
    %26 = vector.load %arg4[%c0_23, %c0_24] : memref<32x32xf32, #tpu.memory_space<vmem>>, vector<32x32xf32>
    %cst_25 = arith.constant dense<0.000000e+00> : vector<32x32xf32>
    %27 = tpu.matmul %26, %7, %cst_25 {dimension_numbers = #tpu.dot_dimension_numbers<[1], [0], [0], [1], [0, 0, 1, 1], [], []>} : vector<32x32xf32>, vector<32x32xf32>, vector<32x32xf32> -> vector<32x32xf32>
    %c0_26 = arith.constant 0 : index
    %c0_27 = arith.constant 0 : index
    %28 = vector.load %arg4[%c0_26, %c0_27] : memref<32x32xf32, #tpu.memory_space<vmem>>, vector<32x32xf32>
    tpu.vector_store %arg4[%c0_26, %c0_27], %27 {strides = array<i32>} : memref<32x32xf32, #tpu.memory_space<vmem>>, vector<32x32xf32>,
    %c0_28 = arith.constant 0 : index
    %c0_29 = arith.constant 0 : index
    %29 = vector.load %arg4[%c0_28, %c0_29] : memref<32x32xf32, #tpu.memory_space<vmem>>, vector<32x32xf32>
    %cst_30 = arith.constant dense<0.000000e+00> : vector<16x32xf32>
    %30 = tpu.matmul %5, %29, %cst_30 {dimension_numbers = #tpu.dot_dimension_numbers<[1], [0], [0], [1], [0, 0, 1, 1], [], []>} : vector<16x32xf32>, vector<32x32xf32>, vector<16x32xf32> -> vector<16x32xf32>
    %c0_31 = arith.constant 0 : index
    %c0_32 = arith.constant 0 : index
    %31 = vector.load %arg4[%c0_31, %c0_32] : memref<32x32xf32, #tpu.memory_space<vmem>>, vector<16x32xf32>
    tpu.vector_store %arg4[%c0_31, %c0_32], %30 {strides = array<i32>} : memref<32x32xf32, #tpu.memory_space<vmem>>, vector<16x32xf32>,
    %c0_33 = arith.constant 0 : index
    %c0_34 = arith.constant 0 : index
    %32 = vector.load %arg4[%c0_33, %c0_34] : memref<32x32xf32, #tpu.memory_space<vmem>>, vector<32x32xf32>
    %33 = vector.broadcast %4 : vector<1x32xf32> to vector<32x32xf32>
    %34 = arith.addf %32, %33 : vector<32x32xf32>
    %cst_35 = arith.constant 0.000000e+00 : f32
    %35 = vector.broadcast %cst_35 : f32 to vector<32x32xf32>
    %36 = arith.maximumf %34, %35 : vector<32x32xf32>
    %c0_36 = arith.constant 0 : index
    %c0_37 = arith.constant 0 : index
    %37 = vector.load %arg4[%c0_36, %c0_37] : memref<32x32xf32, #tpu.memory_space<vmem>>, vector<32x32xf32>
    tpu.vector_store %arg4[%c0_36, %c0_37], %36 {strides = array<i32>} : memref<32x32xf32, #tpu.memory_space<vmem>>, vector<32x32xf32>,
    %c0_38 = arith.constant 0 : index
    %c0_39 = arith.constant 0 : index
    %38 = vector.load %arg4[%c0_38, %c0_39] : memref<32x32xf32, #tpu.memory_space<vmem>>, vector<16x32xf32>
    %cst_40 = arith.constant dense<0xFF800000> : vector<32xf32>
    %39 = vector.multi_reduction <maximumf>, %38, %cst_40 [0] : vector<16x32xf32> to vector<32xf32>
    %40 = vector.shape_cast %39 : vector<32xf32> to vector<1x32xf32>
    %c16_41 = arith.constant 16 : index
    %c0_42 = arith.constant 0 : index
    %41 = vector.load %arg4[%c16_41, %c0_42] : memref<32x32xf32, #tpu.memory_space<vmem>>, vector<16x32xf32>
    %cst_43 = arith.constant dense<0xFF800000> : vector<32xf32>
    %42 = vector.multi_reduction <maximumf>, %41, %cst_43 [0] : vector<16x32xf32> to vector<32xf32>
    %43 = vector.shape_cast %42 : vector<32xf32> to vector<1x32xf32>
    %44 = tpu.concatenate %40, %43 in 0 : vector<1x32xf32>, vector<1x32xf32> -> vector<2x32xf32>
    %c0_44 = arith.constant 0 : index
    %c0_45 = arith.constant 0 : index
    %45 = vector.load %arg3[%c0_44, %c0_45] : memref<2x32xf32, #tpu.memory_space<vmem>>, vector<2x32xf32>
    tpu.vector_store %arg3[%c0_44, %c0_45], %44 {strides = array<i32>} : memref<2x32xf32, #tpu.memory_space<vmem>>, vector<2x32xf32>,
    return
  }
  func.func @transform_0(%arg0: i32) -> (i32, i32) {
    %c0_i32 = arith.constant 0 : i32
    %c0_i32_0 = arith.constant 0 : i32
    %c0_i32_1 = arith.constant 0 : i32
    return %c0_i32, %c0_i32_0 : i32, i32
  }
  func.func @transform_1(%arg0: i32) -> (i32, i32) {
    %c0_i32 = arith.constant 0 : i32
    %c0_i32_0 = arith.constant 0 : i32
    %c0_i32_1 = arith.constant 0 : i32
    return %c0_i32, %c0_i32_0 : i32, i32
  }
  func.func @transform_2(%arg0: i32) -> (i32, i32) {
    %c0_i32 = arith.constant 0 : i32
    %c0_i32_0 = arith.constant 0 : i32
    %c0_i32_1 = arith.constant 0 : i32
    return %c0_i32, %c0_i32_0 : i32, i32
  }
}

</mosaic_0001>

<bundles_post_ra>
// kernel: tpu_custom_call.1
= control target key start
LH: loop header
LB: loop body
LE: loop exit
PB: predicated region body
PF: predicated region fallthrough
CT: control target
= control target key end

     0   :  { %s490_s0 = inlined_call_operand.vmem [shape: f32[32,1], index: 0, kind: input, shape index: {}]   ;;  %s491_s1 = inlined_call_operand.vmem [shape: f32[136,32], index: 1, kind: input, shape index: {}]   ;;  %s492_s2 = inlined_call_operand.hbm [shape: f32[2,32], index: 2, kind: output, shape index: {}]  }
   0x1   :  { %v17_v0 = vld [vmem:[%s491_s1 + $0x28] sm:$0xff]  ;;  %v16_v1 = vld [vmem:[%s491_s1 + $0x20] sm:$0xff]  ;;  %v15_v2 = vld [vmem:[%s491_s1 + $0x18] sm:$0xff] }
   0x2   :  { %51 = vmatpush.msra.mxu0 %v17_v0  ;;  %324 = vmatpush.msra.mxu1 %v17_v0  ;;  %v14_v3 = vld [vmem:[%s491_s1 + $0x10] sm:$0xff] }
   0x4   :  { %52 = vmatpush.msra.mxu0 %v16_v1  ;;  %325 = vmatpush.msra.mxu1 %v16_v1 }
   0x5   :  { %7 = vsyncpa [#allocation4], 0  ;;  %v12_v4 = vld [vmem:[%s491_s1] sm:$0xff]  ;;  %vm32_vm0 = vcmask 261120   ;;  %v13_v5 = vld [vmem:[%s491_s1 + $0x8] sm:$0xff]  ;;  %v365_v12 = vmov 0  }
   0x6   :  { %53 = vmatpush.msra.mxu0 %v15_v2  ;;  %326 = vmatpush.msra.mxu1 %v15_v2  ;;  %v26_v6 = vld [vmem:[%s491_s1 + $0x60] sm:$0xff]  ;;  %v25_v7 = vld [vmem:[%s491_s1 + $0x58] sm:$0xff]  ;;  %v24_v8 = vld [vmem:[%s491_s1 + $0x50] sm:$0xff]  ;;  %s303_s29 = sshll.u32 %s492_s2, 4  ;;  %vm292_vm1 = vcmask 1040384   ;;  %vm294_vm2 = vcmask 254976   ;;  %s304_s29 = int_to_ptr.hbm [resolvable:$true] %s303_s29 }
   0x7   :  { %v23_v9 = vld [vmem:[%s491_s1 + $0x48] sm:$0xff]  ;;  %v94_v10 = vld [vmem:[%s490_s0 + $0x18] sm:$0xff]  ;;  %335 = vset.pattern.permute.xlu1 %v365_v12  ;;  %334 = vset.pattern.permute.xlu0 %v365_v12  ;;  %v93_v13 = vld [vmem:[%s490_s0 + $0x10] sm:$0xff] }
   0x8   :  { %54 = vmatpush.msra.mxu0 %v14_v3  ;;  %327 = vmatpush.msra.mxu1 %v14_v3  ;;  %v92_v11 = vld [vmem:[%s490_s0 + $0x8] sm:$0xff]  ;;  %v91_v14 = vld [vmem:[%s490_s0] sm:$0xff]  ;;  %v336_v15 = vld [vmem:[%s491_s1 + $0x30] ss:$0 sm:$0xff] }
   0x9   :  { %312 = vmatmul.msk.f32.vlgmr.msra.gmra.mxu0 %vm32_vm0, %v12_v4  ;;  %313 = vmatmul.msk.f32.vlgmr.msra.gmra.mxu1 %vm32_vm0, %v13_v5  ;;  %v337_v28 = vld [vmem:[%s491_s1 + $0x31] ss:$0 sm:$0xff]  ;;  %v21_v38 = vld [vmem:[%s491_s1 + $0x38] sm:$0xff]  ;;  %v22_v40 = vld [vmem:[%s491_s1 + $0x40] sm:$0xff] }
   0xa   :  { %80 = vmatpush.msrb.mxu1 %v26_v6  ;;  %112 = vperm.xlu0 %334, %v94_v10   ;;  %v30_v41 = vld [vmem:[%s491_s1 + $0x80] sm:$0xff]  ;;  %v29_v42 = vld [vmem:[%s491_s1 + $0x78] sm:$0xff]  ;;  %v28_v43 = vld [vmem:[%s491_s1 + $0x70] sm:$0xff] }
   0xb   :  { %102 = vperm.xlu1 %335, %v92_v11   ;;  %328 = vmatpush.msra.mxu3 %v30_v41  ;;  %v27_v44 = vld [vmem:[%s491_s1 + $0x68] sm:$0xff]  ;;  %v338_v60 = vld [vmem:[%s491_s1 + $0x32] ss:$0 sm:$0xff]  ;;  %s366_s1 = smov [#allocation3]  }
   0xc   :  { %81 = vmatpush.msrb.mxu1 %v25_v7  ;;  %s301_s26 = sshll.u32 %s366_s1, 4  ;;  %s302_s26 = int_to_ptr.vmem [resolvable:$true] %s301_s26 }
   0xd   :  { %329 = vmatpush.msra.mxu3 %v29_v42 }
   0xe   :  { %82 = vmatpush.msrb.mxu1 %v24_v8 }
   0xf   :  { %330 = vmatpush.msra.mxu3 %v28_v43 }
  0x10   :  { %83 = vmatpush.msrb.mxu1 %v23_v9 }
  0x11   :  { %331 = vmatpush.msra.mxu3 %v27_v44 }
  0x12   :  { %107 = vperm.xlu0 %334, %v93_v13  }
  0x13   :  { %97 = vperm.xlu1 %335, %v91_v14  }
  0x7c   :  { %v113_v20 = vpop.permute.xlu0 %112 }
  0x7d   :  { %v103_v21 = vpop.permute.xlu1 %102 }
  0x84   :  { %v108_v22 = vpop.permute.xlu0 %107 }
  0x85   :  { %v98_v23 = vpop.permute.xlu1 %97 }
  0x86   :  { %v56_v16 = vpop.f32.mrf.mxu0  ;;  %v59_v18 = vpop.f32.mrf.mxu1 }
  0x87   :  { %v57_v17 = vadd.f32 %v336_v15, %v56_v16  ;;  %v60_v19 = vadd.f32 %v336_v15, %v59_v18 }
  0x89   :  { %314 = vmatmul.msk.f32.vlgmr.msrb.gmra.mxu1 %vm32_vm0, %v57_v17 }
  0x91   :  { %315 = vmatmul.msk.f32.gmra.mxu1 %vm32_vm0, %v60_v19 }
 0x106   :  { %v85_v24 = vpop.f32.mrf.mxu1 }
 0x107   :  { %v115_v25 = vmul.f32 %v98_v23, %v85_v24  ;;  %v117_v26 = vmul.f32 %v108_v22, %v85_v24 }
 0x109   :  { %119 = vst.msk [vmem:[#allocation2] sm:$0xff] %vm32_vm0, %v115_v25 }
 0x10a   :  { %121 = vst.msk [vmem:[#allocation2 + $0x10] sm:$0xff] %vm32_vm0, %v117_v26 }
 0x10e   :  { %v88_v27 = vpop.f32.mrf.mxu1 }
 0x10f   :  { %v116_v29 = vmul.f32 %v103_v21, %v88_v27  ;;  %v118_v30 = vmul.f32 %v113_v20, %v88_v27 }
 0x110   :  { %v123_v39 = vld [vmem:[#allocation2] sm:$0xff] }
 0x111   :  { %120 = vst.msk [vmem:[#allocation2 + $0x8] sm:$0xff] %vm32_vm0, %v116_v29  ;;  %v125_v31 = vld [vmem:[#allocation2 + $0x10] sm:$0xff] }
 0x112   :  { %122 = vst.msk [vmem:[#allocation2 + $0x18] sm:$0xff] %vm32_vm0, %v118_v30  ;;  %v165_v32 = vadd.f32 %v337_v28, %v125_v31 }
 0x114   :  { %v169_v33 = vmax.f32 %v165_v32, 0.0 }
 0x116   :  { %173 = vst.msk [vmem:[#allocation2 + $0x10] sm:$0xff] %vm32_vm0, %v169_v33 }
 0x118   :  { %v124_v37 = vld [vmem:[#allocation2 + $0x8] sm:$0xff] }
 0x119   :  { %v126_v34 = vld [vmem:[#allocation2 + $0x18] sm:$0xff] }
 0x11a   :  { %145 = vmatpush.msra.mxu2 %v126_v34  ;;  %v166_v35 = vadd.f32 %v337_v28, %v126_v34 }
 0x11c   :  { %v170_v36 = vmax.f32 %v166_v35, 0.0  ;;  %146 = vmatpush.msra.mxu2 %v125_v31 }
 0x11d   :  { %v177_v55 = vld [vmem:[#allocation2 + $0x10] sm:$0xff] }
 0x11e   :  { %174 = vst.msk [vmem:[#allocation2 + $0x18] sm:$0xff] %vm32_vm0, %v170_v36  ;;  %147 = vmatpush.msra.mxu2 %v124_v37 }
 0x120   :  { %148 = vmatpush.msra.mxu2 %v123_v39 }
 0x121   :  { %316 = vmatmul.msk.f32.vlgmr.msra.gmra.mxu2 %vm32_vm0, %v21_v38 }
 0x122   :  { %203 = vmatpush.msrb.mxu2 %v30_v41 }
 0x124   :  { %204 = vmatpush.msrb.mxu2 %v29_v42 }
 0x125   :  { %v178_v56 = vld [vmem:[#allocation2 + $0x18] sm:$0xff] }
 0x126   :  { %205 = vmatpush.msrb.mxu2 %v28_v43 }
 0x128   :  { %206 = vmatpush.msrb.mxu2 %v27_v44 }
 0x129   :  { %317 = vmatmul.msk.f32.gmra.mxu2 %vm32_vm0, %v22_v40 }
 0x1a4   :  { %v150_v45 = vpop.f32.mrf.mxu2 }
 0x1a5   :  { %156 = vst.msk [vmem:[#allocation2] sm:$0xff] %vm32_vm0, %v150_v45 }
 0x1ac   :  { %v158_v46 = vld [vmem:[#allocation2] sm:$0xff]  ;;  %v153_v47 = vpop.f32.mrf.mxu2 }
 0x1ad   :  { %v163_v48 = vadd.f32 %v337_v28, %v158_v46  ;;  %157 = vst.msk [vmem:[#allocation2 + $0x8] sm:$0xff] %vm32_vm0, %v153_v47 }
 0x1af   :  { %v167_v49 = vmax.f32 %v163_v48, 0.0 }
 0x1b1   :  { %171 = vst.msk [vmem:[#allocation2] sm:$0xff] %vm32_vm0, %v167_v49 }
 0x1b4   :  { %v159_v50 = vld [vmem:[#allocation2 + $0x8] sm:$0xff] }
 0x1b5   :  { %v164_v51 = vadd.f32 %v337_v28, %v159_v50 }
 0x1b7   :  { %v168_v52 = vmax.f32 %v164_v51, 0.0 }
 0x1b8   :  { %v175_v53 = vld [vmem:[#allocation2] sm:$0xff] }
 0x1b9   :  { %172 = vst.msk [vmem:[#allocation2 + $0x8] sm:$0xff] %vm32_vm0, %v168_v52  ;;  %318 = vmatmul.msk.f32.vlgmr.msrb.gmra.mxu2 %vm32_vm0, %v175_v53 }
 0x1c0   :  { %v176_v54 = vld [vmem:[#allocation2 + $0x8] sm:$0xff] }
 0x1c1   :  { %319 = vmatmul.msk.f32.vlgmr.msra.gmra.mxu3 %vm32_vm0, %v176_v54 }
 0x1c9   :  { %320 = vmatmul.msk.f32.gmra.mxu3 %vm32_vm0, %v177_v55 }
 0x1d1   :  { %321 = vmatmul.msk.f32.gmra.mxu3 %vm32_vm0, %v178_v56 }
 0x23c   :  { %v208_v57 = vpop.f32.mrf.mxu2 }
 0x23d   :  { %220 = vst.msk [vmem:[#allocation2] sm:$0xff] %vm32_vm0, %v208_v57 }
 0x244   :  { %v211_v58 = vpop.f32.mrf.mxu3  ;;  %v224_v5 = vld [vmem:[#allocation2] sm:$0xff] }
 0x245   :  { %221 = vst.msk [vmem:[#allocation2 + $0x8] sm:$0xff] %vm32_vm0, %v211_v58 }
 0x24c   :  { %v214_v59 = vpop.f32.mrf.mxu3  ;;  %v225_v4 = vld [vmem:[#allocation2 + $0x8] sm:$0xff] }
 0x24d   :  { %222 = vst.msk [vmem:[#allocation2 + $0x10] sm:$0xff] %vm32_vm0, %v214_v59 }
 0x254   :  { %v217_v61 = vpop.f32.mrf.mxu3  ;;  %v226_v62 = vld [vmem:[#allocation2 + $0x10] sm:$0xff] }
 0x255   :  { %223 = vst.msk [vmem:[#allocation2 + $0x18] sm:$0xff] %vm32_vm0, %v217_v61  ;;  %v260_v63 = vadd.f32 %v338_v60, %v226_v62 }
 0x257   :  { %v264_v0 = vmax.f32 %v260_v63, 0.0 }
 0x259   :  { %268 = vst.msk [vmem:[#allocation2 + $0x10] sm:$0xff] %vm32_vm0, %v264_v0 }
 0x25c   :  { %v227_v1 = vld [vmem:[#allocation2 + $0x18] sm:$0xff] }
 0x25d   :  { %240 = vmatpush.msrb.mxu0 %v227_v1  ;;  %v261_v2 = vadd.f32 %v338_v60, %v227_v1 }
 0x25f   :  { %v265_v3 = vmax.f32 %v261_v2, 0.0  ;;  %241 = vmatpush.msrb.mxu0 %v226_v62 }
 0x260   :  { %v281_v12 = vld [vmem:[#allocation2 + $0x10] sm:$0xff] }
 0x261   :  { %269 = vst.msk [vmem:[#allocation2 + $0x18] sm:$0xff] %vm32_vm0, %v265_v3  ;;  %242 = vmatpush.msrb.mxu0 %v225_v4  ;;  %v283_v16 = vsel %vm32_vm0, %v281_v12, -inf }
 0x263   :  { %243 = vmatpush.msrb.mxu0 %v224_v5 }
 0x264   :  { %322 = vmatmul.msk.f32.vlgmr.msrb.gmra.mxu0 %vm32_vm0, %v21_v38 }
 0x268   :  { %v282_v11 = vld [vmem:[#allocation2 + $0x18] sm:$0xff] }
 0x269   :  { %v284_v13 = vsel %vm32_vm0, %v282_v11, -inf }
 0x26a   :  { %v285_v17 = vmax.f32 %v283_v16, %v284_v13 }
 0x26c   :  { %323 = vmatmul.msk.f32.gmra.mxu0 %vm32_vm0, %v22_v40  ;;  %v286_v19 = vrot.slane %v285_v17, 4 }
 0x26e   :  { %v287_v21 = vmax.f32 %v285_v17, %v286_v19 }
 0x270   :  { %v288_v26 = vrot.slane %v287_v21, 2 }
 0x272   :  { %v289_v29 = vmax.f32 %v287_v21, %v288_v26 }
 0x274   :  { %v290_v32 = vrot.slane %v289_v29, 1 }
 0x276   :  { %v291_v35 = vmax.f32 %v289_v29, %v290_v32 }
 0x2e1   :  { %v245_v6 = vpop.f32.mrf.mxu0 }
 0x2e2   :  { %251 = vst.msk [vmem:[#allocation2] sm:$0xff] %vm32_vm0, %v245_v6 }
 0x2e9   :  { %v253_v7 = vld [vmem:[#allocation2] sm:$0xff]  ;;  %v248_v8 = vpop.f32.mrf.mxu0 }
 0x2ea   :  { %v258_v9 = vadd.f32 %v338_v60, %v253_v7  ;;  %252 = vst.msk [vmem:[#allocation2 + $0x8] sm:$0xff] %vm32_vm0, %v248_v8 }
 0x2ec   :  { %v262_v10 = vmax.f32 %v258_v9, 0.0 }
 0x2ee   :  { %266 = vst.msk [vmem:[#allocation2] sm:$0xff] %vm32_vm0, %v262_v10 }
 0x2f1   :  { %v254_v14 = vld [vmem:[#allocation2 + $0x8] sm:$0xff] }
 0x2f2   :  { %v259_v15 = vadd.f32 %v338_v60, %v254_v14 }
 0x2f4   :  { %v263_v18 = vmax.f32 %v259_v15, 0.0 }
 0x2f5   :  { %v270_v20 = vld [vmem:[#allocation2] sm:$0xff] }
 0x2f6   :  { %267 = vst.msk [vmem:[#allocation2 + $0x8] sm:$0xff] %vm32_vm0, %v263_v18  ;;  %v272_v23 = vsel %vm32_vm0, %v270_v20, -inf }
 0x2fd   :  { %v271_v22 = vld [vmem:[#allocation2 + $0x8] sm:$0xff] }
 0x2fe   :  { %v273_v24 = vsel %vm32_vm0, %v271_v22, -inf }
 0x2ff   :  { %v274_v25 = vmax.f32 %v272_v23, %v273_v24 }
 0x301   :  { %v275_v27 = vrot.slane %v274_v25, 4 }
 0x303   :  { %v276_v28 = vmax.f32 %v274_v25, %v275_v27 }
 0x305   :  { %v277_v30 = vrot.slane %v276_v28, 2 }
 0x307   :  { %v278_v31 = vmax.f32 %v276_v28, %v277_v30 }
 0x309   :  { %v279_v33 = vrot.slane %v278_v31, 1 }
 0x30b   :  { %v280_v34 = vmax.f32 %v278_v31, %v279_v33 }
 0x30d   :  { %v293_v36 = vsel %vm292_vm1, %v280_v34, %v291_v35 }
 0x30e   :  { %295 = vst.msk [vmem:[#allocation3] sm:$0x3] %vm294_vm2, %v293_v36 }
 0x30f   :  { %306 = dma.vmem_to_hbm [thread:$0]  %s302_s26, 32, %s304_s29, [#allocation4]  }
 0x310   :  { %363 = dma.done.wait [#allocation4], 32  }
 0x311   :  { %364 = vsyncadd [#allocation4], 4294967264 }
 0x312   :  { %311 = vsyncpa [#allocation4], 1 }

</bundles_post_ra>
